<compile_context>
chip_gen: v7x
topology: tpu7x:2x2x1
jax: 0.10.0
libtpu: 0.0.40
codegen_flags: <defaults>
</compile_context>

<pallas_src>
import functools

import jax
import jax.numpy as jnp
from jax import lax
from jax.experimental import pallas as pl
from jax.experimental.pallas import tpu as pltpu


def _round_up(a, b):
    return (a + b - 1) // b * b


def _label_smoothing_kernel(
    x_ref, xt_ref, loss_ref,            # inputs / per-row output
    m_sc, l_sc, sx_sc,                  # per-row-block running state (VMEM)
    *, n_rows, n_cols, confidence, smooth_over_c,
    block_n, block_c, num_c_chunks, c_ragged,
):
    i = pl.program_id(0)                # row-block index ("parallel")

    # ---------------- single class-chunk fast path (no online LSE) ----------
    if num_c_chunks == 1:
        x = x_ref[...].astype(jnp.float32)                      # (bn, C)
        m = jnp.max(x, axis=-1, keepdims=True)
        l = jnp.sum(jnp.exp(x - m), axis=-1, keepdims=True)
        sx = jnp.sum(x, axis=-1, keepdims=True)
        loss_row = (m + jnp.log(l)
                    - confidence * xt_ref[...]
                    - smooth_over_c * sx)
        row_ids = (lax.broadcasted_iota(jnp.int32, loss_row.shape, 0)
                   + i * block_n)
        loss_ref[...] = jnp.where(row_ids < n_rows, loss_row, 0.0)
        return

    # ---------------- multi-chunk path: online logsumexp over class chunks --
    k = pl.program_id(1)                # class-chunk index (reduction, last)
    nk = pl.num_programs(1)

    @pl.when(k == 0)
    def _init():
        m_sc[...] = jnp.full_like(m_sc, -1e30)
        l_sc[...] = jnp.zeros_like(l_sc)
        sx_sc[...] = jnp.zeros_like(sx_sc)

    x = x_ref[...].astype(jnp.float32)                          # (bn, bc)

    def _update(x_max_fill, x_sum_fill):
        # x_max_fill: masked columns filled with -1e30 (exp underflows to 0)
        # x_sum_fill: masked columns filled with 0
        m_new = jnp.maximum(m_sc[...],
                            jnp.max(x_max_fill, axis=-1, keepdims=True))
        alpha = jnp.exp(m_sc[...] - m_new)
        p_sum = jnp.sum(jnp.exp(x_max_fill - m_new), axis=-1, keepdims=True)
        l_sc[...] = alpha * l_sc[...] + p_sum
        m_sc[...] = m_new
        sx_sc[...] += jnp.sum(x_sum_fill, axis=-1, keepdims=True)

    if c_ragged:
        # Fast path: full chunks, zero masking work.
        @pl.when(k < nk - 1)
        def _fast():
            _update(x, x)

        # Slow path: only the last (ragged) class chunk masks columns >= C.
        @pl.when(k == nk - 1)
        def _slow():
            col = lax.broadcasted_iota(jnp.int32, x.shape, 1) + k * block_c
            colmask = col < n_cols
            _update(jnp.where(colmask, x, -1e30),
                    jnp.where(colmask, x, 0.0))
    else:
        _update(x, x)

    @pl.when(k == nk - 1)
    def _finalize():
        loss_row = (m_sc[...] + jnp.log(l_sc[...])
                    - confidence * xt_ref[...]
                    - smooth_over_c * sx_sc[...])
        row_ids = (lax.broadcasted_iota(jnp.int32, loss_row.shape, 0)
                   + i * block_n)
        # Zero any ragged-last-row-block garbage rows (also clipped on writeback).
        loss_ref[...] = jnp.where(row_ids < n_rows, loss_row, 0.0)


def label_smoothing_loss(x, target, smoothing=0.1, *,
                         block_n=256, block_c=4096):
    """x: [N, C] float (f32 or bf16) logits, target: [N] int labels.
    Returns scalar f32 mean label-smoothed NLL loss (matches the PyTorch module)."""
    n, c = x.shape
    confidence = 1.0 - smoothing

    # Row block: multiple of 8 sublanes. Class block: full C if it fits,
    # otherwise a lane-dense (multiple-of-128) chunk; the ragged last chunk
    # is masked in-kernel.  No HBM-side padding of x.
    bn = min(block_n, _round_up(n, 8))
    bc = c if c <= block_c else block_c

    grid = (pl.cdiv(n, bn), pl.cdiv(c, bc))
    num_c_chunks = grid[1]
    c_ragged = (c % bc) != 0

    # Target logit gathered on the host side of the kernel: touches only N
    # elements of HBM instead of an in-kernel per-element one-hot select.
    xt = jnp.take_along_axis(
        x, target.astype(jnp.int32)[:, None], axis=-1).astype(jnp.float32)

    kernel = functools.partial(
        _label_smoothing_kernel,
        n_rows=n, n_cols=c,
        confidence=float(confidence),
        smooth_over_c=float(smoothing) / float(c),
        block_n=bn, block_c=bc,
        num_c_chunks=num_c_chunks, c_ragged=c_ragged,
    )

    per_row = pl.pallas_call(
        kernel,
        out_shape=jax.ShapeDtypeStruct((n, 1), jnp.float32),
        grid_spec=pltpu.PrefetchScalarGridSpec(
            num_scalar_prefetch=0,
            grid=grid,
            in_specs=[
                pl.BlockSpec((bn, bc), lambda i, k: (i, k)),   # logits tile
                pl.BlockSpec((bn, 1), lambda i, k: (i, 0)),    # target logits
            ],
            out_specs=pl.BlockSpec((bn, 1), lambda i, k: (i, 0)),
            scratch_shapes=[pltpu.VMEM((bn, 1), jnp.float32)] * 3,
        ),
        compiler_params=pltpu.CompilerParams(
            # rows independent (megacore-friendly); class axis is the reduction.
            dimension_semantics=("parallel", "arbitrary"),
        ),
    )(x, xt)

    # Final mean over the true batch.
    return jnp.sum(per_row) / n


def _reference(x, target, smoothing=0.1):
    confidence = 1.0 - smoothing
    logprobs = jax.nn.log_softmax(x.astype(jnp.float32), axis=-1)
    nll = -jnp.take_along_axis(logprobs, target[:, None], axis=-1)[:, 0]
    smooth = -jnp.mean(logprobs, axis=-1)
    return jnp.mean(confidence * nll + smoothing * smooth)


if __name__ == "__main__":
    key = jax.random.PRNGKey(0)
    smoothing = 0.1

    # --- small single-tile case (matches module usage: batch of logits) ---
    kx, kt = jax.random.split(key)
    N, C = 8, 32
    x = jax.random.normal(kx, (N, C), dtype=jnp.float32)
    target = jax.random.randint(kt, (N,), 0, C, dtype=jnp.int32)

    loss = jax.block_until_ready(label_smoothing_loss(x, target, smoothing))
    ref = _reference(x, target, smoothing)
    assert jnp.allclose(loss, ref, atol=1e-5, rtol=1e-5), (loss, ref)

    # --- ragged / multi-chunk path: ragged rows + ragged last class chunk ---
    kx2, kt2 = jax.random.split(kt)
    N2, C2 = 20, 300
    x2 = jax.random.normal(kx2, (N2, C2), dtype=jnp.float32)
    target2 = jax.random.randint(kt2, (N2,), 0, C2, dtype=jnp.int32)

    loss2 = jax.block_until_ready(
        label_smoothing_loss(x2, target2, smoothing, block_n=8, block_c=128))
    ref2 = _reference(x2, target2, smoothing)
    assert jnp.allclose(loss2, ref2, atol=1e-5, rtol=1e-5), (loss2, ref2)

    # --- bf16 logits streamed end-to-end (no wrapper upcast) ---
    x3 = x2.astype(jnp.bfloat16)
    loss3 = jax.block_until_ready(
        label_smoothing_loss(x3, target2, smoothing, block_n=8, block_c=128))
    ref3 = _reference(x3, target2, smoothing)
    assert jnp.allclose(loss3, ref3, atol=2e-2, rtol=2e-2), (loss3, ref3)

    print("KERNEL_OK")
</pallas_src>

<mosaic_0001>
module attributes {stable_mosaic.version = 11 : i64} {
  func.func @_label_smoothing_kernel(%arg0: i32, %arg1: i32, %arg2: memref<8x32xf32, #tpu.memory_space<vmem>>, %arg3: memref<8x1xf32, #tpu.memory_space<vmem>>, %arg4: memref<8x1xf32, #tpu.memory_space<vmem>>, %arg5: memref<8x1xf32, #tpu.memory_space<vmem>>, %arg6: memref<8x1xf32, #tpu.memory_space<vmem>>, %arg7: memref<8x1xf32, #tpu.memory_space<vmem>>) attributes {dimension_semantics = [#tpu.dimension_semantics<parallel>, #tpu.dimension_semantics<arbitrary>], iteration_bounds = array<i64: 1, 1>, scalar_prefetch = 0 : i64, scratch_operands = 3 : i64, tpu.core_type = #tpu.core_type<tc>, window_params = [{transform_indices = @transform_0, window_bounds = array<i64: 8, 32>}, {transform_indices = @transform_1, window_bounds = array<i64: 8, 1>}, {transform_indices = @transform_2, window_bounds = array<i64: 8, 1>}]} {
    %c0 = arith.constant 0 : index
    %c0_0 = arith.constant 0 : index
    %0 = vector.load %arg2[%c0, %c0_0] : memref<8x32xf32, #tpu.memory_space<vmem>>, vector<8x32xf32>
    %cst = arith.constant dense<0xFF800000> : vector<8xf32>
    %1 = vector.multi_reduction <maximumf>, %0, %cst [1] : vector<8x32xf32> to vector<8xf32>
    %2 = vector.shape_cast %1 : vector<8xf32> to vector<8x1xf32>
    %3 = vector.broadcast %2 : vector<8x1xf32> to vector<8x32xf32>
    %4 = arith.subf %0, %3 : vector<8x32xf32>
    %5 = math.exp %4 : vector<8x32xf32>
    %cst_1 = arith.constant dense<0.000000e+00> : vector<8xf32>
    %6 = vector.multi_reduction <add>, %5, %cst_1 [1] : vector<8x32xf32> to vector<8xf32>
    %7 = vector.shape_cast %6 : vector<8xf32> to vector<8x1xf32>
    %cst_2 = arith.constant dense<0.000000e+00> : vector<8xf32>
    %8 = vector.multi_reduction <add>, %0, %cst_2 [1] : vector<8x32xf32> to vector<8xf32>
    %9 = vector.shape_cast %8 : vector<8xf32> to vector<8x1xf32>
    %10 = math.log %7 : vector<8x1xf32>
    %11 = arith.addf %2, %10 : vector<8x1xf32>
    %c0_3 = arith.constant 0 : index
    %c0_4 = arith.constant 0 : index
    %12 = vector.load %arg3[%c0_3, %c0_4] : memref<8x1xf32, #tpu.memory_space<vmem>>, vector<8x1xf32>
    %cst_5 = arith.constant 0.899999976 : f32
    %13 = vector.broadcast %cst_5 : f32 to vector<8x1xf32>
    %14 = arith.mulf %13, %12 : vector<8x1xf32>
    %15 = arith.subf %11, %14 : vector<8x1xf32>
    %cst_6 = arith.constant 3.125000e-03 : f32
    %16 = vector.broadcast %cst_6 : f32 to vector<8x1xf32>
    %17 = arith.mulf %16, %9 : vector<8x1xf32>
    %18 = arith.subf %15, %17 : vector<8x1xf32>
    %19 = tpu.iota {dimensions = array<i32: 0>} : vector<8x1xi32>
    %c8_i32 = arith.constant 8 : i32
    %20 = arith.muli %arg0, %c8_i32 : i32
    %21 = vector.broadcast %20 : i32 to vector<8x1xi32>
    %22 = arith.addi %19, %21 : vector<8x1xi32>
    %c8_i32_7 = arith.constant 8 : i32
    %23 = vector.broadcast %c8_i32_7 : i32 to vector<8x1xi32>
    %24 = arith.cmpi slt, %22, %23 : vector<8x1xi32>
    %cst_8 = arith.constant 0.000000e+00 : f32
    %25 = vector.broadcast %cst_8 : f32 to vector<8x1xf32>
    %26 = arith.select %24, %18, %25 : vector<8x1xi1>, vector<8x1xf32>
    %c0_9 = arith.constant 0 : index
    %c0_10 = arith.constant 0 : index
    %27 = vector.load %arg4[%c0_9, %c0_10] : memref<8x1xf32, #tpu.memory_space<vmem>>, vector<8x1xf32>
    tpu.vector_store %arg4[%c0_9, %c0_10], %26 {strides = array<i32>} : memref<8x1xf32, #tpu.memory_space<vmem>>, vector<8x1xf32>,
    return
  }
  func.func @transform_0(%arg0: i32, %arg1: i32) -> (i32, i32) {
    %c0_i32 = arith.constant 0 : i32
    return %arg0, %arg1 : i32, i32
  }
  func.func @transform_1(%arg0: i32, %arg1: i32) -> (i32, i32) {
    %c0_i32 = arith.constant 0 : i32
    %c0_i32_0 = arith.constant 0 : i32
    return %arg0, %c0_i32 : i32, i32
  }
  func.func @transform_2(%arg0: i32, %arg1: i32) -> (i32, i32) {
    %c0_i32 = arith.constant 0 : i32
    %c0_i32_0 = arith.constant 0 : i32
    return %arg0, %c0_i32 : i32, i32
  }
}

</mosaic_0001>

<bundles_post_ra>
// kernel: tpu_custom_call.1
= control target key start
LH: loop header
LB: loop body
LE: loop exit
PB: predicated region body
PF: predicated region fallthrough
CT: control target
= control target key end

     0   :  { %vm12_vm0 = vcmask 261120   ;;  %vm40_vm1 = vcmask 7168   ;;  %s74_s0 = inlined_call_operand.vmem [shape: f32[8,32], index: 0, kind: input, shape index: {}]   ;;  %s75_s1 = inlined_call_operand.vmem [shape: f32[8,1], index: 1, kind: input, shape index: {}]   ;;  %s76_s2 = inlined_call_operand.vmem [shape: f32[8,1], index: 2, kind: output, shape index: {}]  }
   0x1   :  { %v11_v0 = vld [vmem:[%s74_s0] sm:$0xff] }
   0x2   :  { %v13_v1 = vsel %vm12_vm0, %v11_v0, -inf  ;;  %v22_v2 = vsel %vm12_vm0, %v11_v0, 0.0  ;;  %v28_v9 = vld [vmem:[%s75_s1] sm:$0xff] }
   0x3   :  { %14 = vmax.xlane.f32.xlu0 %v13_v1  ;;  %23 = vadd.xlane.f32.xlu1 %v22_v2  ;;  %v29_v13 = vmul.f32 0.9, %v28_v9 }
  0x90   :  { %v15_v3 = vpop.xlane.xlu0 %14  ;;  %v24_v11 = vpop.xlane.xlu1 %23 }
  0x91   :  { %v16_v4 = vsub.f32 %v11_v0, %v15_v3  ;;  %v31_v15 = vmul.f32 0.003125, %v24_v11 }
  0x93   :  { %v17_v5 = vmul.f32 1.442695, %v16_v4 }
  0x95   :  { %46 = vpow2.f32 %v17_v5 }
  0x9f   :  { %v47_v6 = vpop.eup %46 }
  0xa0   :  { %v19_v7 = vsel %vm12_vm0, %v47_v6, 0.0 }
  0xa1   :  { %20 = vadd.xlane.f32.xlu0 %v19_v7 }
 0x12e   :  { %v21_v8 = vpop.xlane.xlu0 %20 }
 0x12f   :  { %48 = vlog2.f32 %v21_v8 }
 0x139   :  { %v49_v10 = vpop.eup %48 }
 0x13a   :  { %v26_v12 = vmul.f32 0.6931472, %v49_v10 }
 0x13c   :  { %v27_v14 = vadd.f32 %v26_v12, %v15_v3 }
 0x13e   :  { %v30_v16 = vsub.f32 %v27_v14, %v29_v13 }
 0x140   :  { %v32_v17 = vsub.f32 %v30_v16, %v31_v15 }
 0x142   :  { %41 = vst.msk [vmem:[%s76_s2] sm:$0xff] %vm40_vm1, %v32_v17 }

</bundles_post_ra>
